<compile_context>
chip_gen: v6e
topology: v6e:2x2x1
jax: 0.10.0
libtpu: 0.0.40
codegen_flags: <defaults>
</compile_context>

<pallas_src>
import jax
import jax.numpy as jnp
from jax.experimental import pallas as pl
from jax.experimental.pallas import tpu as pltpu


def _round_up(n, m):
    return ((n + m - 1) // m) * m


def _discriminator_kernel(x_ref, w1_ref, b1_ref, w2c_ref, b2_ref, o_ref):
    # Layer 1 on the MXU: bf16 operands (x cast in-kernel; free VPU work),
    # f32 accumulation.  Epilogue stays f32 (v5e has no bf16 VPU/EUP path).
    x = x_ref[...].astype(jnp.bfloat16)                        # (TILE_B, L)
    h = jnp.dot(x, w1_ref[...], preferred_element_type=jnp.float32)
    h = jnp.maximum(h + b1_ref[...], 0.0)                      # (TILE_B, L) f32

    # Layer 2 (L -> 1), lane-dense: transpose h once on the XLU, weight by the
    # w2 column (lane-broadcast), reduce over sublanes.  Result (1, TILE_B) is
    # lane-dense, so sigmoid runs on ~TILE_B/1024 vregs and the store is wide.
    hT = jnp.transpose(h)                                      # (L, TILE_B) XLU
    logit = jnp.sum(hT * w2c_ref[...], axis=0, keepdims=True)  # (1, TILE_B)
    logit = logit + b2_ref[0, 0]                               # scalar bias (SMEM)

    o_ref[...] = jax.nn.sigmoid(logit).astype(o_ref.dtype)     # EUP sigmoid


def discriminator_forward(x, w1, b1, w2, b2, *, tile_b=8192):
    """x: (B, L) f32; w1: (L, L); b1: (1, L); w2: (L, 1); b2: (1, 1) -> (B, 1)."""
    B, L = x.shape
    assert w1.shape == (L, L) and w2.shape == (L, 1)

    # Batch tile: multiple of 8 (f32 sublane tiling), never larger than the
    # (rounded) batch, and small enough to give >=2 grid steps when possible so
    # the "parallel" batch axis can shard across both TensorCores on v7x.
    tile_b = max(8, min(tile_b,
                        _round_up(pl.cdiv(B, 2), 128),
                        _round_up(B, 8)))
    n_steps = pl.cdiv(B, tile_b)

    # Parameters: tiny, made VMEM/SMEM-resident across all grid steps.
    w1_bf = w1.astype(jnp.bfloat16)                        # (L, L) bf16, 32 KiB
    b1_2d = jnp.asarray(b1, jnp.float32).reshape(1, L)     # (1, L)
    w2_col = jnp.asarray(w2, jnp.float32).reshape(L, 1)    # (L, 1) for sublane reduce
    b2_2d = jnp.asarray(b2, jnp.float32).reshape(1, 1)     # (1, 1) scalar -> SMEM

    cost = pl.CostEstimate(
        flops=2 * B * L * L + 3 * B * L,
        transcendentals=2 * B,
        bytes_accessed=B * L * 4 + n_steps * tile_b * 4 + L * L * 2 + 2 * L * 4 + 4,
    )

    out = pl.pallas_call(
        _discriminator_kernel,
        out_shape=jax.ShapeDtypeStruct((n_steps, tile_b), jnp.float32),
        grid_spec=pltpu.PrefetchScalarGridSpec(
            num_scalar_prefetch=0,
            grid=(n_steps,),
            in_specs=[
                # x: streamed per batch tile (double-buffered by Pallas); the
                # partial last block is handled by the pipeline (no jnp.pad).
                pl.BlockSpec((tile_b, L), lambda i: (i, 0)),
                # Weights/biases: constant block index -> fetched once, resident.
                pl.BlockSpec((L, L), lambda i: (0, 0)),
                pl.BlockSpec((1, L), lambda i: (0, 0)),
                pl.BlockSpec((L, 1), lambda i: (0, 0)),
                # b2: scalar in SMEM (no wasted (8,128) VMEM tile / vld).
                pl.BlockSpec(memory_space=pltpu.MemorySpace.SMEM),
            ],
            # Lane-dense output row per grid step.
            out_specs=pl.BlockSpec((1, tile_b), lambda i: (i, 0)),
        ),
        compiler_params=pltpu.CompilerParams(
            dimension_semantics=("parallel",),        # megacore / v7x 2nd TC
            vmem_limit_bytes=32 * 1024 * 1024,        # safe on v5e/v6e/v7x
        ),
        cost_estimate=cost,
    )(x, w1_bf, b1_2d, w2_col, b2_2d)

    # (n_steps, tile_b) row-major == batch order; drop the padded tail entries.
    return out.reshape(-1)[:B].reshape(B, 1)


def init_params(key, latent_space=128):
    """Deterministic synthetic init mimicking nn.Linear's U(-1/sqrt(fan_in), +)."""
    k1, k2, k3, k4 = jax.random.split(key, 4)
    bound1 = 1.0 / jnp.sqrt(latent_space)
    # Weights stored pre-transposed: (in_features, out_features)
    w1 = jax.random.uniform(k1, (latent_space, latent_space), jnp.float32,
                            -bound1, bound1)
    b1 = jax.random.uniform(k2, (1, latent_space), jnp.float32, -bound1, bound1)
    w2 = jax.random.uniform(k3, (latent_space, 1), jnp.float32, -bound1, bound1)
    b2 = jax.random.uniform(k4, (1, 1), jnp.float32, -bound1, bound1)
    return w1, b1, w2, b2


if __name__ == "__main__":
    latent_space = 128
    batch = 8

    key = jax.random.PRNGKey(0)
    k_x, k_p = jax.random.split(key)
    x = jax.random.normal(k_x, (batch, latent_space), jnp.float32)
    w1, b1, w2, b2 = init_params(k_p, latent_space)

    out = discriminator_forward(x, w1, b1, w2, b2)
    out = jax.block_until_ready(out)
    assert out.shape == (batch, 1)

    # Reference 1: same math with the same bf16 first-layer operands (tight).
    h_bf = jnp.maximum(
        jnp.dot(x.astype(jnp.bfloat16), w1.astype(jnp.bfloat16),
                preferred_element_type=jnp.float32) + b1, 0.0)
    ref_bf = jax.nn.sigmoid(
        jnp.sum(h_bf * w2.reshape(1, -1), axis=-1, keepdims=True) + b2)
    assert jnp.allclose(out, ref_bf, atol=1e-3, rtol=1e-3)

    # Reference 2: full-f32 PyTorch-equivalent forward (loose, bf16 rounding).
    ref_f32 = jax.nn.sigmoid(jnp.maximum(x @ w1 + b1, 0.0) @ w2 + b2)
    assert jnp.allclose(out, ref_f32, atol=1e-2, rtol=1e-2)

    print("KERNEL_OK")
</pallas_src>

<mosaic_0001>
module attributes {stable_mosaic.version = 11 : i64} {
  func.func @_discriminator_kernel(%arg0: i32, %arg1: memref<8x128xf32, #tpu.memory_space<vmem>>, %arg2: memref<128x128xbf16, #tpu.memory_space<vmem>>, %arg3: memref<1x128xf32, #tpu.memory_space<vmem>>, %arg4: memref<128x1xf32, #tpu.memory_space<vmem>>, %arg5: memref<1x1xf32, #tpu.memory_space<smem>>, %arg6: memref<1x8xf32, #tpu.memory_space<vmem>>) attributes {dimension_semantics = [#tpu.dimension_semantics<parallel>], iteration_bounds = array<i64: 1>, scalar_prefetch = 0 : i64, scratch_operands = 0 : i64, tpu.core_type = #tpu.core_type<tc>, window_params = [{transform_indices = @transform_0, window_bounds = array<i64: 8, 128>}, {pipeline_mode = #tpu.pipeline_mode<synchronous>, transform_indices = @transform_1, window_bounds = array<i64: 128, 128>}, {pipeline_mode = #tpu.pipeline_mode<synchronous>, transform_indices = @transform_2, window_bounds = array<i64: 1, 128>}, {pipeline_mode = #tpu.pipeline_mode<synchronous>, transform_indices = @transform_3, window_bounds = array<i64: 128, 1>}, {transform_indices = @transform_4, window_bounds = array<i64: 1, 1>}, {transform_indices = @transform_5, window_bounds = array<i64: 1, 8>}]} {
    %c0 = arith.constant 0 : index
    %c0_0 = arith.constant 0 : index
    %0 = vector.load %arg1[%c0, %c0_0] : memref<8x128xf32, #tpu.memory_space<vmem>>, vector<8x128xf32>
    %1 = arith.truncf %0 : vector<8x128xf32> to vector<8x128xbf16>
    %c0_1 = arith.constant 0 : index
    %c0_2 = arith.constant 0 : index
    %2 = vector.load %arg2[%c0_1, %c0_2] : memref<128x128xbf16, #tpu.memory_space<vmem>>, vector<128x128xbf16>
    %cst = arith.constant dense<0.000000e+00> : vector<8x128xf32>
    %3 = tpu.matmul %1, %2, %cst {dimension_numbers = #tpu.dot_dimension_numbers<[1], [0], [0], [1], [0, 0, 1, 1], [], []>} : vector<8x128xbf16>, vector<128x128xbf16>, vector<8x128xf32> -> vector<8x128xf32>
    %c0_3 = arith.constant 0 : index
    %c0_4 = arith.constant 0 : index
    %4 = vector.load %arg3[%c0_3, %c0_4] : memref<1x128xf32, #tpu.memory_space<vmem>>, vector<1x128xf32>
    %5 = vector.broadcast %4 : vector<1x128xf32> to vector<8x128xf32>
    %6 = arith.addf %3, %5 : vector<8x128xf32>
    %cst_5 = arith.constant 0.000000e+00 : f32
    %7 = vector.broadcast %cst_5 : f32 to vector<8x128xf32>
    %8 = arith.maximumf %6, %7 : vector<8x128xf32>
    %9 = tpu.transpose %8, [1, 0] : vector<8x128xf32> -> vector<128x8xf32>
    %c0_6 = arith.constant 0 : index
    %c0_7 = arith.constant 0 : index
    %10 = vector.load %arg4[%c0_6, %c0_7] : memref<128x1xf32, #tpu.memory_space<vmem>>, vector<128x1xf32>
    %11 = vector.broadcast %10 : vector<128x1xf32> to vector<128x8xf32>
    %12 = arith.mulf %9, %11 : vector<128x8xf32>
    %cst_8 = arith.constant dense<0.000000e+00> : vector<8xf32>
    %13 = vector.multi_reduction <add>, %12, %cst_8 [0] : vector<128x8xf32> to vector<8xf32>
    %14 = vector.shape_cast %13 : vector<8xf32> to vector<1x8xf32>
    %c0_9 = arith.constant 0 : index
    %c0_10 = arith.constant 0 : index
    %15 = memref.load %arg5[%c0_9, %c0_10] : memref<1x1xf32, #tpu.memory_space<smem>>
    %16 = vector.broadcast %15 : f32 to vector<1x8xf32>
    %17 = arith.addf %14, %16 : vector<1x8xf32>
    %18 = arith.negf %17 : vector<1x8xf32>
    %19 = math.exp %18 : vector<1x8xf32>
    %cst_11 = arith.constant 1.000000e+00 : f32
    %20 = vector.broadcast %cst_11 : f32 to vector<1x8xf32>
    %21 = arith.addf %20, %19 : vector<1x8xf32>
    %22 = arith.divf %20, %21 : vector<1x8xf32>
    %c0_12 = arith.constant 0 : index
    %c0_13 = arith.constant 0 : index
    %23 = vector.load %arg6[%c0_12, %c0_13] : memref<1x8xf32, #tpu.memory_space<vmem>>, vector<1x8xf32>
    tpu.vector_store %arg6[%c0_12, %c0_13], %22 {strides = array<i32>} : memref<1x8xf32, #tpu.memory_space<vmem>>, vector<1x8xf32>,
    return
  }
  func.func @transform_0(%arg0: i32) -> (i32, i32) {
    %c0_i32 = arith.constant 0 : i32
    %c0_i32_0 = arith.constant 0 : i32
    return %arg0, %c0_i32 : i32, i32
  }
  func.func @transform_1(%arg0: i32) -> (i32, i32) {
    %c0_i32 = arith.constant 0 : i32
    %c0_i32_0 = arith.constant 0 : i32
    %c0_i32_1 = arith.constant 0 : i32
    return %c0_i32, %c0_i32_0 : i32, i32
  }
  func.func @transform_2(%arg0: i32) -> (i32, i32) {
    %c0_i32 = arith.constant 0 : i32
    %c0_i32_0 = arith.constant 0 : i32
    %c0_i32_1 = arith.constant 0 : i32
    return %c0_i32, %c0_i32_0 : i32, i32
  }
  func.func @transform_3(%arg0: i32) -> (i32, i32) {
    %c0_i32 = arith.constant 0 : i32
    %c0_i32_0 = arith.constant 0 : i32
    %c0_i32_1 = arith.constant 0 : i32
    return %c0_i32, %c0_i32_0 : i32, i32
  }
  func.func @transform_4(%arg0: i32) -> (i32, i32) {
    %c0_i32 = arith.constant 0 : i32
    %c0_i32_0 = arith.constant 0 : i32
    %c0_i32_1 = arith.constant 0 : i32
    return %c0_i32, %c0_i32_0 : i32, i32
  }
  func.func @transform_5(%arg0: i32) -> (i32, i32) {
    %c0_i32 = arith.constant 0 : i32
    %c0_i32_0 = arith.constant 0 : i32
    return %arg0, %c0_i32 : i32, i32
  }
}

</mosaic_0001>

<bundles_post_ra>
// kernel: tpu_custom_call.1
= control target key start
LH: loop header
LB: loop body
LE: loop exit
PB: predicated region body
PF: predicated region fallthrough
CT: control target
= control target key end

     0   :  { %v423_v1 = vmov 0.0   ;;  %vm424_vm0 = vmmov 0   ;;  %v425_v3 = vmov 0   ;;  %s557_s0 = inlined_call_operand.vmem [shape: f32[8,128], index: 0, kind: input, shape index: {}]   ;;  %s558_s1 = inlined_call_operand.vmem [shape: bf16[128,128], index: 1, kind: input, shape index: {}]   ;;  %s559_s2 = inlined_call_operand.vmem [shape: f32[1,128], index: 2, kind: input, shape index: {}]   ;;  %s560_s3 = inlined_call_operand.vmem [shape: f32[128,1], index: 3, kind: input, shape index: {}]   ;;  %s561_s4 = inlined_call_operand.<no memory space> [shape: f32[1,1], index: 4, kind: input, shape index: {}]   ;;  %s562_s5 = inlined_call_operand.hbm [shape: f32[1,8], index: 5, kind: output, shape index: {}]  }
   0x1   :  { %v389_v0 = vld [vmem:[%s558_s1 + $0x38] sm:$0xff]   ;;  %363 = vmatprep.subr.bf16.mxu0 %v423_v1  ;;  %v390_v2 = vld [vmem:[%s558_s1 + $0x30] sm:$0xff]   ;;  %379 = vmatprep.mubr.msk.bf16.mxu0 %vm424_vm0, %v423_v1  ;;  %v391_v4 = vld [vmem:[%s558_s1 + $0x28] sm:$0xff]  }
   0x2   :  { %364 = vmatpush3.bf16.msra.mxu0 %v389_v0  ;;  %388 = vset.pattern.permute.xlu1 %v425_v3  ;;  %v171_v5 = vld [vmem:[%s560_s3 + $0x10] sm:$0xff]  ;;  %v392_v6 = vld [vmem:[%s558_s1 + $0x20] sm:$0xff]   ;;  %v172_v7 = vld [vmem:[%s560_s3 + $0x18] sm:$0xff] }
   0x3   :  { %365 = vmatprep.subr.bf16.mxu0 %v423_v1  ;;  %387 = vset.pattern.permute.xlu0 %v425_v3 }
   0x4   :  { %197 = vperm.xlu1 %388, %v171_v5  }
   0x6   :  { %366 = vmatpush3.bf16.msra.mxu0 %v390_v2 }
   0x7   :  { %367 = vmatprep.subr.bf16.mxu0 %v423_v1 }
   0xa   :  { %368 = vmatpush3.bf16.msra.mxu0 %v391_v4 }
   0xb   :  { %369 = vmatprep.subr.bf16.mxu0 %v423_v1 }
   0xc   :  { %11 = vsyncpa [#allocation4], 0  ;;  %202 = vperm.xlu1 %388, %v172_v7   ;;  %v393_v8 = vld [vmem:[%s558_s1 + $0x18] sm:$0xff]   ;;  %v174_v9 = vld [vmem:[%s560_s3 + $0x28] sm:$0xff]  ;;  %vm281_vm1 = vcmask 64512   ;;  %s426_s18 = smov [#allocation3]  }
   0xd   :  { %v394_v10 = vld [vmem:[%s558_s1 + $0x10] sm:$0xff]   ;;  %v176_v11 = vld [vmem:[%s560_s3 + $0x38] sm:$0xff]  ;;  %v395_v12 = vld [vmem:[%s558_s1 + $0x8] sm:$0xff]   ;;  %s336_s19 = sshll.u32 %s426_s18, 4  ;;  %vm328_vm2 = vcmask 57344   ;;  %s337_s19 = int_to_ptr.vmem [resolvable:$true] %s336_s19 }
   0xe   :  { %370 = vmatpush3.bf16.msra.mxu0 %v392_v6  ;;  %v178_v13 = vld [vmem:[%s560_s3 + $0x48] sm:$0xff]  ;;  %v396_v14 = vld [vmem:[%s558_s1] sm:$0xff]   ;;  %v180_v16 = vld [vmem:[%s560_s3 + $0x58] sm:$0xff]  ;;  %s401_s20 = scalar_lea.vmem %s337_s19, 16  ;;  %s405_s21 = scalar_lea.vmem %s337_s19, 32 }
   0xf   :  { %371 = vmatprep.subr.bf16.mxu0 %v423_v1  ;;  %v23_v15 = vld [vmem:[%s557_s0] sm:$0xff]  ;;  %v182_v18 = vld [vmem:[%s560_s3 + $0x68] sm:$0xff]  ;;  %v175_v22 = vld [vmem:[%s560_s3 + $0x30] sm:$0xff]  ;;  %p402_p0 = scmp.ne.s32.totalorder %s337_s19, %s401_s20  ;;  %p406_p1 = scmp.lt.s32.totalorder %s337_s19, %s337_s19 }
  0x10   :  { %212 = vperm.xlu1 %388, %v174_v9   ;;  %v24_v17 = vpack.c.bf16 %v23_v15, %v23_v15  ;;  %v169_v19 = vld [vmem:[%s560_s3] sm:$0xff]  ;;  %v170_v20 = vld [vmem:[%s560_s3 + $0x8] sm:$0xff]  ;;  %v179_v24 = vld [vmem:[%s560_s3 + $0x50] sm:$0xff]  ;;  %p407_p2 = scmp.lt.s32.totalorder %s405_s21, %s401_s20 }
  0x11   :  { %187 = vperm.xlu0 %387, %v169_v19   ;;  %v173_v21 = vld [vmem:[%s560_s3 + $0x20] sm:$0xff]  ;;  %v183_v26 = vld [vmem:[%s560_s3 + $0x70] sm:$0xff]  ;;  %v184_v27 = vld [vmem:[%s560_s3 + $0x78] sm:$0xff] }
  0x12   :  { %372 = vmatpush3.bf16.msra.mxu0 %v393_v8  ;;  %v177_v23 = vld [vmem:[%s560_s3 + $0x40] sm:$0xff]  ;;  %p408_p3 = por %p407_p2, %p406_p1 }
  0x13   :  { %373 = vmatprep.subr.bf16.mxu0 %v423_v1  ;;  %v181_v25 = vld [vmem:[%s560_s3 + $0x60] sm:$0xff] }
  0x14   :  { %222 = vperm.xlu1 %388, %v176_v11   ;;  %v344_v28 = vld [vmem:[%s559_s2] ss:$0 sm:$0xff]  ;;  %p409_p4 = pnand %p408_p3, %p402_p0 }
  0x15   :  { %192 = vperm.xlu0 %387, %v170_v20  }
  0x16   :  { %374 = vmatpush3.bf16.msra.mxu0 %v394_v10 }
  0x17   :  { %375 = vmatprep.subr.bf16.mxu0 %v423_v1 }
  0x18   :  { %232 = vperm.xlu1 %388, %v178_v13  }
  0x19   :  { %207 = vperm.xlu0 %387, %v173_v21  }
  0x1a   :  { %376 = vmatpush3.bf16.msra.mxu0 %v395_v12 }
  0x1b   :  { %377 = vmatprep.subr.bf16.mxu0 %v423_v1 }
  0x1c   :  { %242 = vperm.xlu1 %388, %v180_v16  }
  0x1d   :  { %217 = vperm.xlu0 %387, %v175_v22  }
  0x1e   :  { %378 = vmatpush3.bf16.msra.mxu0 %v396_v14 }
  0x20   :  { %252 = vperm.xlu1 %388, %v182_v18  }
  0x21   :  { %380 = vmatmul.mubr.bf16.vlgmr.msra.gmra.mxu0 %v24_v17  ;;  %227 = vperm.xlu0 %387, %v177_v23  }
  0x25   :  { %237 = vperm.xlu0 %387, %v179_v24  }
  0x29   :  { %247 = vperm.xlu0 %387, %v181_v25  }
  0x2d   :  { %257 = vperm.xlu0 %387, %v183_v26  }
  0x31   :  { %262 = vperm.xlu0 %387, %v184_v27  }
  0x7f   :  { %v198_v35 = vpop.permute.xlu1 %197 }
  0x87   :  { %v203_v36 = vpop.permute.xlu1 %202 }
  0x8b   :  { %v213_v37 = vpop.permute.xlu1 %212 }
  0x8c   :  { %v188_v45 = vpop.permute.xlu0 %187 }
  0x8f   :  { %v223_v38 = vpop.permute.xlu1 %222 }
  0x90   :  { %v193_v48 = vpop.permute.xlu0 %192 }
  0x93   :  { %v233_v39 = vpop.permute.xlu1 %232 }
  0x94   :  { %v208_v50 = vpop.permute.xlu0 %207 }
  0x97   :  { %v243_v40 = vpop.permute.xlu1 %242 }
  0x98   :  { %v218_v54 = vpop.permute.xlu0 %217 }
  0x9b   :  { %v253_v41 = vpop.permute.xlu1 %252 }
  0x9c   :  { %v228_v0 = vpop.permute.xlu0 %227 }
  0xa0   :  { %v238_v11 = vpop.permute.xlu0 %237 }
  0xa4   :  { %v248_v22 = vpop.permute.xlu0 %247 }
  0xe1   :  { %v130_v29 = vpop.f32.mrf.mxu0 }
  0xe2   :  { %v131_v30 = vadd.f32 %v344_v28, %v130_v29 }
  0xe3   :  { %v381_v31 = vpop.f32.mrf.mxu0 }
  0xe4   :  { %v136_v32 = vmax.f32 %v131_v30, 0.0 }
  0xe5   :  { %v133_v33 = vpop.f32.mrf.mxu0 }
  0xe6   :  { %137 = vxpose.xlu1.b32.start.end [1/1] (short) %v136_v32, 128 }
  0xe7   :  { %v382_v34 = vpop.f32.mrf.mxu0 }
  0xe8   :  { %v258_v34 = vpop.permute.xlu0 %257 }
 0x162   :  { %v153_v42 = vpop.trf.xlu1 }
 0x163   :  { %v265_v55 = vmul.f32 %v188_v45, %v153_v42 }
 0x165   :  { %v282_v60 = vsel %vm281_vm1, %v265_v55, 0.0  ;;  %v320_v55 = vstv %s561_s4 }
 0x166   :  { %v154_v43 = vpop.trf.xlu1 }
 0x167   :  { %v266_v53 = vmul.f32 %v193_v48, %v154_v43 }
 0x169   :  { %v283_v58 = vsel %vm281_vm1, %v266_v53, 0.0 }
 0x16a   :  { %v155_v44 = vpop.trf.xlu1  ;;  %v284_v63 = vadd.f32 %v283_v58, %v282_v60 }
 0x16b   :  { %v267_v56 = vmul.f32 %v198_v35, %v155_v44  ;;  %v263_v44 = vpop.permute.xlu0 %262 }
 0x16d   :  { %v285_v61 = vsel %vm281_vm1, %v267_v56, 0.0 }
 0x16e   :  { %v156_v46 = vpop.trf.xlu1  ;;  %v286_v4 = vadd.f32 %v285_v61, %v284_v63 }
 0x16f   :  { %v268_v59 = vmul.f32 %v203_v36, %v156_v46 }
 0x171   :  { %v287_v2 = vsel %vm281_vm1, %v268_v59, 0.0 }
 0x172   :  { %v157_v47 = vpop.trf.xlu1  ;;  %v288_v7 = vadd.f32 %v287_v2, %v286_v4 }
 0x173   :  { %v269_v62 = vmul.f32 %v208_v50, %v157_v47 }
 0x175   :  { %v289_v5 = vsel %vm281_vm1, %v269_v62, 0.0 }
 0x176   :  { %v158_v49 = vpop.trf.xlu1  ;;  %v290_v12 = vadd.f32 %v289_v5, %v288_v7 }
 0x177   :  { %v270_v3 = vmul.f32 %v213_v37, %v158_v49 }
 0x179   :  { %v291_v9 = vsel %vm281_vm1, %v270_v3, 0.0 }
 0x17a   :  { %v159_v51 = vpop.trf.xlu1  ;;  %v292_v15 = vadd.f32 %v291_v9, %v290_v12 }
 0x17b   :  { %v271_v6 = vmul.f32 %v218_v54, %v159_v51 }
 0x17d   :  { %v293_v13 = vsel %vm281_vm1, %v271_v6, 0.0 }
 0x17e   :  { %v160_v52 = vpop.trf.xlu1  ;;  %v294_v19 = vadd.f32 %v293_v13, %v292_v15 }
 0x17f   :  { %v272_v10 = vmul.f32 %v223_v38, %v160_v52 }
 0x181   :  { %v295_v17 = vsel %vm281_vm1, %v272_v10, 0.0 }
 0x182   :  { %v161_v57 = vpop.trf.xlu1  ;;  %v296_v23 = vadd.f32 %v295_v17, %v294_v19 }
 0x183   :  { %v273_v14 = vmul.f32 %v228_v0, %v161_v57 }
 0x185   :  { %v297_v20 = vsel %vm281_vm1, %v273_v14, 0.0 }
 0x186   :  { %v162_v1 = vpop.trf.xlu1  ;;  %v298_v27 = vadd.f32 %v297_v20, %v296_v23 }
 0x187   :  { %v274_v18 = vmul.f32 %v233_v39, %v162_v1 }
 0x189   :  { %v299_v25 = vsel %vm281_vm1, %v274_v18, 0.0 }
 0x18a   :  { %v163_v8 = vpop.trf.xlu1  ;;  %v300_v30 = vadd.f32 %v299_v25, %v298_v27 }
 0x18b   :  { %v275_v21 = vmul.f32 %v238_v11, %v163_v8 }
 0x18d   :  { %v301_v28 = vsel %vm281_vm1, %v275_v21, 0.0 }
 0x18e   :  { %v164_v16 = vpop.trf.xlu1  ;;  %v302_v35 = vadd.f32 %v301_v28, %v300_v30 }
 0x18f   :  { %v276_v26 = vmul.f32 %v243_v40, %v164_v16 }
 0x191   :  { %v303_v32 = vsel %vm281_vm1, %v276_v26, 0.0 }
 0x192   :  { %v165_v24 = vpop.trf.xlu1  ;;  %v304_v37 = vadd.f32 %v303_v32, %v302_v35 }
 0x193   :  { %v277_v29 = vmul.f32 %v248_v22, %v165_v24 }
 0x195   :  { %v305_v36 = vsel %vm281_vm1, %v277_v29, 0.0 }
 0x196   :  { %v166_v31 = vpop.trf.xlu1  ;;  %v306_v43 = vadd.f32 %v305_v36, %v304_v37 }
 0x197   :  { %v278_v33 = vmul.f32 %v253_v41, %v166_v31 }
 0x199   :  { %v307_v39 = vsel %vm281_vm1, %v278_v33, 0.0 }
 0x19a   :  { %v167_v38 = vpop.trf.xlu1  ;;  %v308_v45 = vadd.f32 %v307_v39, %v306_v43 }
 0x19b   :  { %v279_v42 = vmul.f32 %v258_v34, %v167_v38 }
 0x19d   :  { %v309_v40 = vsel %vm281_vm1, %v279_v42, 0.0 }
 0x19e   :  { %v168_v46 = vpop.trf.xlu1  ;;  %v310_v48 = vadd.f32 %v309_v40, %v308_v45 }
 0x19f   :  { %v280_v47 = vmul.f32 %v263_v44, %v168_v46 }
 0x1a1   :  { %v311_v49 = vsel %vm281_vm1, %v280_v47, 0.0 }
 0x1a2   :  { %v312_v41 = vadd.f32 %v311_v49, %v310_v48 }
 0x1a4   :  { %v313_v50 = vrot.slane %v312_v41, 4 }
 0x1a6   :  { %v314_v51 = vadd.f32 %v313_v50, %v312_v41 }
 0x1a8   :  { %v315_v52 = vrot.slane %v314_v51, 2 }
 0x1aa   :  { %v316_v53 = vadd.f32 %v315_v52, %v314_v51 }
 0x1ac   :  { %v317_v54 = vrot.slane %v316_v53, 1 }
 0x1ae   :  { %v318_v56 = vadd.f32 %v317_v54, %v316_v53 }
 0x1b0   :  { %v321_v57 = vadd.f32 %v320_v55, %v318_v56 }
 0x1b2   :  { %v353_v58 = vmul.f32 -1.442695, %v321_v57 }
 0x1b4   :  { %397 = vpow2.f32 %v353_v58 }
 0x1c1   :  { %v398_v59 = vpop.eup %397 }
 0x1c2   :  { %v325_v60 = vadd.f32 1.0, %v398_v59 }
 0x1c4   :  { %399 = vrcp.f32 %v325_v60 }
 0x1d1   :  { %v400_v61 = vpop.eup %399 }
 0x1d2   :  { %329 = vst.msk [vmem:[#allocation3] sm:$0x1] %vm328_vm2, %v400_v61 }
 0x1d3   :  { %412 = shalt.err (!%p409_p4)
}
 0x1d4   :  { %339 = dma.vmem_to_hbm [thread:$0]  %s337_s19, 16, %s562_s5, [#allocation4]  }
 0x1d5   :  { %421 = dma.done.wait [#allocation4], 16  }
 0x1d6   :  { %422 = vsyncadd [#allocation4], 4294967280 }
 0x1d7   :  { %343 = vsyncpa [#allocation4], 1 }

</bundles_post_ra>
